<compile_context>
chip_gen: v7x
topology: tpu7x:2x2x1
jax: 0.10.0
libtpu: 0.0.40
codegen_flags: <defaults>
</compile_context>

<pallas_src>
import functools

import jax
import jax.numpy as jnp
from jax.experimental import pallas as pl
from jax.experimental.pallas import tpu as pltpu


def _round_up(a: int, m: int) -> int:
    return (a + m - 1) // m * m


def _sublane(dtype) -> int:
    # Minimum sublane multiple for a tile of this dtype (f32->8, bf16->16, i8->32).
    return max(8, 32 // jnp.dtype(dtype).itemsize)


def _vmem_limit_bytes(required: int) -> int:
    """Generation-aware VMEM budget (no double-counted safety factor)."""
    try:
        cap = int(pltpu.get_tpu_info().vmem_capacity_bytes)
    except Exception:
        cap = 64 * 1024 * 1024  # conservative fallback = v7x per-TC VMEM
    budget = (cap * 3) // 4     # headroom for compiler-internal scratch
    want = required + required // 4 + (2 << 20)
    return max(4 << 20, min(want, budget))


def _fused_linear_kernel(x_ref, w_ref, b_ref, o_ref, *, compute_dtype):
    # Cast the streamed x tile in VMEM (no extra HBM pass), MXU matmul with
    # f32 accumulation, f32 bias add, cast to the output dtype.
    x = x_ref[...].astype(compute_dtype)
    acc = jnp.dot(x, w_ref[...], preferred_element_type=jnp.float32)
    o_ref[...] = (acc + b_ref[...]).astype(o_ref.dtype)


def _fused_linear(x, wp, bp, *, block_rows=512, out_dtype=None):
    """x: (N, fdim) original dtype; wp: (fdim, W) compute dtype, W % 128 == 0;
    bp: (1, W) f32.  Returns (N, W) in out_dtype (default x.dtype)."""
    N, fdim = x.shape
    W = wp.shape[1]
    assert W % 128 == 0, "fused weight width must be lane-aligned"
    out_dtype = x.dtype if out_dtype is None else out_dtype
    compute_dtype = wp.dtype

    sub = max(_sublane(x.dtype), _sublane(out_dtype))
    tn = max(sub, min(_round_up(block_rows, sub), _round_up(N, sub)))
    grid = (pl.cdiv(N, tn),)  # ragged last block is masked by Pallas

    x_bytes = jnp.dtype(x.dtype).itemsize
    c_bytes = jnp.dtype(compute_dtype).itemsize
    o_bytes = jnp.dtype(out_dtype).itemsize
    vmem_bytes = (
        2 * tn * fdim * x_bytes   # double-buffered x tile
        + fdim * W * c_bytes      # resident fused weights
        + W * 4                   # resident bias (f32)
        + 2 * tn * W * o_bytes    # double-buffered output tile
    )

    kernel = functools.partial(_fused_linear_kernel, compute_dtype=compute_dtype)
    return pl.pallas_call(
        kernel,
        out_shape=jax.ShapeDtypeStruct((N, W), out_dtype),
        grid=grid,
        in_specs=[
            # Streamed row tiles of x (original dtype).  If profiling shows
            # exposed DMA at large fdim, add pipeline_mode=pl.Buffered(3).
            pl.BlockSpec((tn, fdim), lambda i: (i, 0)),
            pl.BlockSpec((fdim, W), lambda i: (0, 0)),  # weights resident
            pl.BlockSpec((1, W), lambda i: (0, 0)),     # bias resident
        ],
        out_specs=pl.BlockSpec((tn, W), lambda i: (i, 0)),
        compiler_params=pltpu.CompilerParams(
            dimension_semantics=("parallel",),
            vmem_limit_bytes=_vmem_limit_bytes(vmem_bytes),
        ),
    )(x, wp, bp)


def prepare_pair_classifiers(w1, b1, w2, b2, *, compute_dtype=jnp.bfloat16):
    """One-time weight preparation (hoisted off the per-call forward path).

    Pads each head to its own lane-aligned slab (multiple of 128 columns) and
    casts to the MXU operand dtype.  Reuse the returned dict across calls.
    """
    fdim, C = w1.shape
    Cp = _round_up(C, 128)

    def pad_w(w):
        return jnp.pad(w, ((0, 0), (0, Cp - C))).astype(compute_dtype)

    def pad_b(b):
        return jnp.pad(b, ((0, 0), (0, Cp - C))).astype(jnp.float32)

    return dict(
        w_pair=jnp.concatenate([pad_w(w1), pad_w(w2)], axis=1),  # (fdim, 2*Cp)
        b_pair=jnp.concatenate([pad_b(b1), pad_b(b2)], axis=1),  # (1, 2*Cp)
        w_single=pad_w(w1),                                      # (fdim, Cp)
        b_single=pad_b(b1),                                      # (1, Cp)
        num_classes=C,
        class_pad=Cp,
    )


def pair_classifiers_fwd(x, params, training=True, *, block_rows=512,
                         out_dtype=None):
    """Forward pass of PairClassifiers.

    x: (N, fdim); params: output of prepare_pair_classifiers().
    training=True -> (z1, z2); training=False -> z1.

    NOTE: with the default bf16 compute_dtype in prepare_pair_classifiers the
    results deviate slightly from the f32 PyTorch Linear; prepare the params
    with compute_dtype=jnp.float32 when exact numerical parity is required.
    """
    C, Cp = params["num_classes"], params["class_pad"]
    if training:
        z = _fused_linear(x, params["w_pair"], params["b_pair"],
                          block_rows=block_rows, out_dtype=out_dtype)
        # Both slices start at lane-aligned offsets (0 and Cp).
        return z[:, :C], z[:, Cp:Cp + C]
    z = _fused_linear(x, params["w_single"], params["b_single"],
                      block_rows=block_rows, out_dtype=out_dtype)
    return z[:, :C]


def init_pair_classifiers(key, fdim, num_classes, dtype=jnp.float32):
    """Deterministic synthetic init mimicking nn.Linear shapes.

    PyTorch stores weight as (num_classes, fdim); we keep the transposed
    (fdim, num_classes) layout so the kernel does a plain x @ W matmul.
    """
    k1, k2, k3, k4 = jax.random.split(key, 4)
    bound = 1.0 / jnp.sqrt(fdim)
    w1 = jax.random.uniform(k1, (fdim, num_classes), dtype, -bound, bound)
    b1 = jax.random.uniform(k2, (1, num_classes), dtype, -bound, bound)
    w2 = jax.random.uniform(k3, (fdim, num_classes), dtype, -bound, bound)
    b2 = jax.random.uniform(k4, (1, num_classes), dtype, -bound, bound)
    return w1, b1, w2, b2


if __name__ == "__main__":
    key = jax.random.PRNGKey(0)
    kx, kp = jax.random.split(key)

    N, fdim, num_classes = 8, 32, 16
    x = jax.random.normal(kx, (N, fdim), jnp.float32)
    w1, b1, w2, b2 = init_pair_classifiers(kp, fdim, num_classes)

    # Prepare (pad + cast) weights ONCE, off the per-call path.
    params_bf16 = prepare_pair_classifiers(w1, b1, w2, b2,
                                           compute_dtype=jnp.bfloat16)

    # training=True path (returns both heads), bf16 MXU operands.
    z1, z2 = pair_classifiers_fwd(x, params_bf16, training=True)
    jax.block_until_ready((z1, z2))

    # eval path (returns z1 only).
    z1_eval = pair_classifiers_fwd(x, params_bf16, training=False)
    jax.block_until_ready(z1_eval)

    # reference check (bf16 operands + f32 accumulation -> relaxed tolerance)
    ref1 = x @ w1 + b1
    ref2 = x @ w2 + b2
    assert z1.shape == ref1.shape and z2.shape == ref2.shape
    assert jnp.allclose(z1, ref1, atol=2e-2, rtol=2e-2), "z1 mismatch"
    assert jnp.allclose(z2, ref2, atol=2e-2, rtol=2e-2), "z2 mismatch"
    assert jnp.allclose(z1_eval, ref1, atol=2e-2, rtol=2e-2), "eval z1 mismatch"

    # Also exercise the exact f32 compute path (tight tolerance).
    params_f32 = prepare_pair_classifiers(w1, b1, w2, b2,
                                          compute_dtype=jnp.float32)
    z1f, z2f = pair_classifiers_fwd(x, params_f32, training=True)
    jax.block_until_ready((z1f, z2f))
    assert jnp.allclose(z1f, ref1, atol=1e-5), "f32 z1 mismatch"
    assert jnp.allclose(z2f, ref2, atol=1e-5), "f32 z2 mismatch"

    print("KERNEL_OK")
</pallas_src>

<mosaic_0001>
module attributes {stable_mosaic.version = 11 : i64} {
  func.func @_fused_linear_kernel(%arg0: i32, %arg1: memref<8x32xf32, #tpu.memory_space<vmem>>, %arg2: memref<32x256xbf16, #tpu.memory_space<vmem>>, %arg3: memref<1x256xf32, #tpu.memory_space<vmem>>, %arg4: memref<8x256xf32, #tpu.memory_space<vmem>>) attributes {dimension_semantics = [#tpu.dimension_semantics<parallel>], iteration_bounds = array<i64: 1>, scalar_prefetch = 0 : i64, scratch_operands = 0 : i64, tpu.core_type = #tpu.core_type<tc>, window_params = [{transform_indices = @transform_0, window_bounds = array<i64: 8, 32>}, {pipeline_mode = #tpu.pipeline_mode<synchronous>, transform_indices = @transform_1, window_bounds = array<i64: 32, 256>}, {pipeline_mode = #tpu.pipeline_mode<synchronous>, transform_indices = @transform_2, window_bounds = array<i64: 1, 256>}, {transform_indices = @transform_3, window_bounds = array<i64: 8, 256>}]} {
    %c0 = arith.constant 0 : index
    %c0_0 = arith.constant 0 : index
    %0 = vector.load %arg1[%c0, %c0_0] : memref<8x32xf32, #tpu.memory_space<vmem>>, vector<8x32xf32>
    %1 = arith.truncf %0 : vector<8x32xf32> to vector<8x32xbf16>
    %c0_1 = arith.constant 0 : index
    %c0_2 = arith.constant 0 : index
    %2 = vector.load %arg2[%c0_1, %c0_2] : memref<32x256xbf16, #tpu.memory_space<vmem>>, vector<32x256xbf16>
    %cst = arith.constant dense<0.000000e+00> : vector<8x256xf32>
    %3 = tpu.matmul %1, %2, %cst {dimension_numbers = #tpu.dot_dimension_numbers<[1], [0], [0], [1], [0, 0, 1, 1], [], []>} : vector<8x32xbf16>, vector<32x256xbf16>, vector<8x256xf32> -> vector<8x256xf32>
    %c0_3 = arith.constant 0 : index
    %c0_4 = arith.constant 0 : index
    %4 = vector.load %arg3[%c0_3, %c0_4] : memref<1x256xf32, #tpu.memory_space<vmem>>, vector<1x256xf32>
    %5 = vector.broadcast %4 : vector<1x256xf32> to vector<8x256xf32>
    %6 = arith.addf %3, %5 : vector<8x256xf32>
    %c0_5 = arith.constant 0 : index
    %c0_6 = arith.constant 0 : index
    %7 = vector.load %arg4[%c0_5, %c0_6] : memref<8x256xf32, #tpu.memory_space<vmem>>, vector<8x256xf32>
    tpu.vector_store %arg4[%c0_5, %c0_6], %6 {strides = array<i32>} : memref<8x256xf32, #tpu.memory_space<vmem>>, vector<8x256xf32>,
    return
  }
  func.func @transform_0(%arg0: i32) -> (i32, i32) {
    %c0_i32 = arith.constant 0 : i32
    %c0_i32_0 = arith.constant 0 : i32
    return %arg0, %c0_i32 : i32, i32
  }
  func.func @transform_1(%arg0: i32) -> (i32, i32) {
    %c0_i32 = arith.constant 0 : i32
    %c0_i32_0 = arith.constant 0 : i32
    %c0_i32_1 = arith.constant 0 : i32
    return %c0_i32, %c0_i32_0 : i32, i32
  }
  func.func @transform_2(%arg0: i32) -> (i32, i32) {
    %c0_i32 = arith.constant 0 : i32
    %c0_i32_0 = arith.constant 0 : i32
    %c0_i32_1 = arith.constant 0 : i32
    return %c0_i32, %c0_i32_0 : i32, i32
  }
  func.func @transform_3(%arg0: i32) -> (i32, i32) {
    %c0_i32 = arith.constant 0 : i32
    %c0_i32_0 = arith.constant 0 : i32
    return %arg0, %c0_i32 : i32, i32
  }
}

</mosaic_0001>

<bundles_post_ra>
// kernel: tpu_custom_call.1
= control target key start
LH: loop header
LB: loop body
LE: loop exit
PB: predicated region body
PF: predicated region fallthrough
CT: control target
= control target key end

     0   :  { %8 = vsyncpa [#allocation3], 0  ;;  %s304_s0 = inlined_call_operand.hbm [shape: f32[8,32], index: 0, kind: input, shape index: {}]   ;;  %s305_s1 = inlined_call_operand.hbm [shape: bf16[32,256], index: 1, kind: input, shape index: {}]   ;;  %s306_s2 = inlined_call_operand.vmem [shape: f32[1,256], index: 2, kind: input, shape index: {}]   ;;  %s307_s3 = inlined_call_operand.hbm [shape: f32[8,256], index: 3, kind: output, shape index: {}]  }
   0x1   :  { %9 = vsyncpa [#allocation6], 0 }
   0x2   :  { %10 = vsyncpa [#allocation4], 0  ;;  %s232_s12 = smov [#allocation2]   ;;  %s233_s14 = smov [#allocation5]  }
   0x3   :  { %s17_s13 = sshll.u32 %s232_s12, 4  ;;  %s26_s15 = sshll.u32 %s233_s14, 4  ;;  %s18_s13 = int_to_ptr.vmem [resolvable:$true] %s17_s13  ;;  %s258_s15 = int_to_ptr.vmem [resolvable:$true] %s26_s15 }
   0x4   :  { %s160_s18 = scalar_lea.hbm %s304_s0, 128 }
   0x5   :  { %p161_p0 = scmp.ne.s32.totalorder %s304_s0, %s160_s18  ;;  %p164_p1 = scmp.lt.u32.totalorder %s160_s18, %s304_s0 }
   0x7   :  { %p166_p2 = pnand %p164_p1, %p161_p0 }
   0x9   :  { %169 = shalt.err (!%p166_p2)
}
   0xa   :  { %s170_s23 = scalar_lea.vmem %s18_s13, 128  ;;  %p175_p4 = scmp.lt.s32.totalorder %s18_s13, %s18_s13 }
   0xb   :  { %p171_p3 = scmp.ne.s32.totalorder %s18_s13, %s170_s23  ;;  %p176_p5 = scmp.lt.s32.totalorder %s170_s23, %s170_s23 }
   0xd   :  { %p177_p6 = por %p176_p5, %p175_p4 }
   0xf   :  { %p178_p7 = pnand %p177_p6, %p171_p3 }
  0x11   :  { %181 = shalt.err (!%p178_p7)
}
  0x12   :  { %20 = dma.hbm_to_vmem [thread:$0]  %s304_s0, 128, %s18_s13, [#allocation3]  }
  0x13   :  { %s182_s28 = scalar_lea.hbm %s305_s1, 512 }
  0x14   :  { %p183_p8 = scmp.ne.s32.totalorder %s305_s1, %s182_s28  ;;  %p186_p9 = scmp.lt.u32.totalorder %s182_s28, %s305_s1 }
  0x16   :  { %p188_p10 = pnand %p186_p9, %p183_p8 }
  0x18   :  { %191 = shalt.err (!%p188_p10)
}
  0x19   :  { %s192_s6 = scalar_lea.vmem %s258_s15, 512  ;;  %p197_p12 = scmp.lt.s32.totalorder %s258_s15, %s258_s15 }
  0x1a   :  { %p193_p11 = scmp.ne.s32.totalorder %s258_s15, %s192_s6  ;;  %p198_p13 = scmp.lt.s32.totalorder %s192_s6, %s192_s6 }
  0x1c   :  { %p199_p0 = por %p198_p13, %p197_p12 }
  0x1e   :  { %p200_p1 = pnand %p199_p0, %p193_p11 }
  0x20   :  { %203 = shalt.err (!%p200_p1)
}
  0x21   :  { %s234_s0 = smov 128   ;;  %s235_s7 = smov 8  }
  0x22   :  { %32 = dma.hbm_to_vmem [thread:$0]  %s305_s1, 512, %s258_s15, [#allocation6], %s234_s0, %s234_s0, %s235_s7  }
  0x23   :  { %226 = dma.done.wait [#allocation3], 128  }
  0x24   :  { %227 = vsyncadd [#allocation3], 4294967168 }
  0x25   :  { %228 = dma.done.wait [#allocation6], 512  }
  0x26   :  { %229 = vsyncadd [#allocation6], 4294966784  ;;  %v236_v0 = vmov 0   ;;  %v154_v1 = vld [vmem:[#allocation5 + $0x4] ss:$8 sps:$4 sm:$0xff]   ;;  %v42_v5 = vld [vmem:[#allocation2] sm:$0xff]  ;;  %v50_v7 = vlaneseq }
  0x27   :  { %116 = vmatprep.mubr.bf16.mxu0 %v236_v0  ;;  %v156_v2 = vld [vmem:[#allocation5] ss:$8 sps:$4 sm:$0xff]   ;;  %84 = vmatprep.subr.bf16.mxu0 %v154_v1  ;;  %v157_v3 = vld [vmem:[#allocation5 + $0x14] ss:$8 sps:$4 sm:$0xff]   ;;  %v159_v4 = vld [vmem:[#allocation5 + $0x10] ss:$8 sps:$4 sm:$0xff]   ;;  %v43_v6 = vpack.c.bf16 %v42_v5, %v42_v5 }
  0x28   :  { %85 = vmatpush1.bf16.msra.mxu0 %v156_v2  ;;  %vm80_vm0 = vcmask 261120   ;;  %v51_v8 = vshrl.u32 %v50_v7, 7  ;;  %v48_v10 = vld [vmem:[%s306_s2] sm:$0x3]  ;;  %s237_s11 = smov [#allocation7]  }
  0x29   :  { %86 = vmatprep.subr.bf16.mxu0 %v157_v3  ;;  %s133_s12 = sshll.u32 %s237_s11, 4  ;;  %s134_s12 = int_to_ptr.vmem [resolvable:$true] %s133_s12 }
  0x2a   :  { %v52_v9 = vsub.s32 0, %v51_v8  ;;  %v56_v11 = vsub.s32 1, %v51_v8  ;;  %s204_s13 = scalar_lea.vmem %s134_s12, 256  ;;  %p209_p3 = scmp.lt.s32.totalorder %s134_s12, %s134_s12 }
  0x2b   :  { %p205_p2 = scmp.ne.s32.totalorder %s134_s12, %s204_s13  ;;  %p210_p4 = scmp.lt.s32.totalorder %s204_s13, %s204_s13 }
  0x2c   :  { %87 = vmatpush1.bf16.msra.mxu0 %v159_v4  ;;  %v53_v12 = vrot.slane %v48_v10, %v52_v9  ;;  %v57_v13 = vrot.slane %v48_v10, %v56_v11 }
  0x2d   :  { %p211_p5 = por %p210_p4, %p209_p3 }
  0x2f   :  { %147 = vmatmul.mubr.msk.bf16.vlgmr.msra.gmra.mrb[0].mxu0 %vm80_vm0, %v43_v6  ;;  %p212_p6 = pnand %p211_p5, %p205_p2 }
 0x102   :  { %v118_v14 = vpop.f32.mrb[0].mxu0 }
 0x103   :  { %v119_v15 = vadd.f32 %v118_v14, %v53_v12  ;;  %v120_v16 = vpop.f32.mrb[1].mxu0 }
 0x104   :  { %v121_v17 = vadd.f32 %v120_v16, %v57_v13  ;;  %v122_v18 = vpop.f32.mrb[2].mxu0 }
 0x105   :  { %125 = vst [vmem:[#allocation7] sm:$0xff] %v119_v15  ;;  %v123_v19 = vpop.f32.mrb[3].mxu0 }
 0x106   :  { %126 = vst [vmem:[#allocation7 + $0x8] sm:$0xff] %v121_v17 }
 0x107   :  { %215 = shalt.err (!%p212_p6)
}
 0x108   :  { %s216_s15 = scalar_lea.hbm %s307_s3, 256 }
 0x109   :  { %p217_p7 = scmp.ne.s32.totalorder %s307_s3, %s216_s15  ;;  %p220_p8 = scmp.lt.u32.totalorder %s216_s15, %s307_s3 }
 0x10b   :  { %p222_p9 = pnand %p220_p8, %p217_p7 }
 0x10d   :  { %225 = shalt.err (!%p222_p9)
}
 0x10e   :  { %136 = dma.vmem_to_hbm [thread:$0]  %s134_s12, 256, %s307_s3, [#allocation4]  }
 0x10f   :  { %230 = dma.done.wait [#allocation4], 256  }
 0x110   :  { %231 = vsyncadd [#allocation4], 4294967040 }
 0x111   :  { %140 = vsyncpa [#allocation3], 1 }
 0x112   :  { %141 = vsyncpa [#allocation6], 1 }
 0x113   :  { %142 = vsyncpa [#allocation4], 1 }

</bundles_post_ra>
